<compile_context>
chip_gen: v5e
topology: v5e:2x2
jax: 0.10.0
libtpu: 0.0.40
codegen_flags: <defaults>
</compile_context>

<pallas_src>
import math
import jax
import jax.numpy as jnp
from jax.experimental import pallas as pl
from jax.experimental.pallas import tpu as pltpu

# --- model config (small, consistent with a tiny BERT config) ---
BATCH = 2
SEQ = 8            # opt.max_seq_length
HIDDEN = 32        # config.hidden_size
NUM_HEADS = 4      # config.num_attention_heads
HEAD_DIM = HIDDEN // NUM_HEADS


def self_attention_kernel(x_ref, wqkv_ref, bqkv_ref, bias_ref, o_ref):
    # x_ref:    (B*S, H)     batch folded into rows
    # wqkv_ref: (H, 3H)      fused [Wq | Wk | Wv]
    # bqkv_ref: (1, 3H)      fused [bq | bk | bv]
    # bias_ref: (B*S, B*S)   0 within the same batch element, -1e30 across batch elements
    BS, H = x_ref.shape
    hd = HEAD_DIM
    scale = 1.0 / math.sqrt(hd)

    # Fused QKV projection: one wide MXU matmul over all rows.
    qkv = jnp.dot(x_ref[...], wqkv_ref[...],
                  preferred_element_type=jnp.float32) + bqkv_ref[...]     # (BS, 3H)

    attn_bias = bias_ref[...]                                             # (BS, BS)

    # Per-head attention. NUM_HEADS is small & static, so a Python loop over lane
    # slices is fine; heads live along lanes, so no relayout/transpose is needed.
    ctx_heads = []
    for h in range(NUM_HEADS):
        q_h = qkv[:, 0 * H + h * hd: 0 * H + (h + 1) * hd]                # (BS, hd)
        k_h = qkv[:, 1 * H + h * hd: 1 * H + (h + 1) * hd]                # (BS, hd)
        v_h = qkv[:, 2 * H + h * hd: 2 * H + (h + 1) * hd]                # (BS, hd)

        # Contract the last dims of q and k (no explicit k.T / XLU transpose).
        scores = jax.lax.dot_general(
            q_h, k_h, (((1,), (1,)), ((), ())),
            preferred_element_type=jnp.float32) * scale                   # (BS, BS)
        # Block-diagonal bias keeps rows attending only within their own batch element
        # (masked entries underflow to exactly 0 after exp, matching the per-batch softmax).
        scores = scores + attn_bias

        # numerically stable softmax over the key axis
        m = jnp.max(scores, axis=-1, keepdims=True)
        e = jnp.exp(scores - m)
        denom = jnp.sum(e, axis=-1, keepdims=True)
        probs = e * pl.reciprocal(denom, approx=False)                    # exact: keeps 1e-5 tol

        ctx_heads.append(jnp.dot(probs, v_h,
                                 preferred_element_type=jnp.float32))     # (BS, hd)

    # Build the full (BS, H) tile in registers, then a single store.
    ctx = jnp.concatenate(ctx_heads, axis=-1)                             # (BS, H)
    o_ref[...] = jnp.tanh(ctx).astype(o_ref.dtype)


def self_attention(x, wq, wk, wv, bq, bk, bv):
    B, S, H = x.shape
    assert S == SEQ and H == HIDDEN
    BS = B * S

    # One-time parameter prep at the JAX level.
    wqkv = jnp.concatenate([wq, wk, wv], axis=1)    # (H, 3H)
    bqkv = jnp.concatenate([bq, bk, bv], axis=1)    # (1, 3H)

    # Fold batch into rows (leading-dim collapse, layout no-op) and build the
    # block-diagonal additive bias that keeps attention within each batch element.
    x2 = x.reshape(BS, H)
    ids = jnp.arange(BS, dtype=jnp.int32) // S
    attn_bias = jnp.where(ids[:, None] == ids[None, :], 0.0, -1e30).astype(jnp.float32)

    # Single grid step: whole problem (~20 KiB) fits trivially in VMEM, so there is nothing
    # to pipeline and per-grid-step overhead would only cost.
    # TODO(synk): at real BERT shapes (S >= 512, H >= 768) switch to a KV-block grid with
    # online softmax (flash pattern) so the scores never fully materialize.
    out2 = pl.pallas_call(
        self_attention_kernel,
        out_shape=jax.ShapeDtypeStruct((BS, H), jnp.float32),
        grid_spec=pltpu.PrefetchScalarGridSpec(
            num_scalar_prefetch=0,
            grid=(1,),
            in_specs=[
                pl.BlockSpec((BS, H), lambda i: (0, 0)),        # x (batch folded)
                pl.BlockSpec((H, 3 * H), lambda i: (0, 0)),     # fused Wqkv
                pl.BlockSpec((1, 3 * H), lambda i: (0, 0)),     # fused bqkv
                pl.BlockSpec((BS, BS), lambda i: (0, 0)),       # block-diagonal bias
            ],
            out_specs=pl.BlockSpec((BS, H), lambda i: (0, 0)),
        ),
        compiler_params=pltpu.CompilerParams(
            dimension_semantics=("arbitrary",)),
    )(x2, wqkv, bqkv, attn_bias)

    return out2.reshape(B, S, H)


def reference(x, wq, wk, wv, bq, bk, bv):
    # pure-JAX reference for sanity checking
    q = x @ wq + bq
    k = x @ wk + bk
    v = x @ wv + bv
    B, S, H = x.shape
    qh = q.reshape(B, S, NUM_HEADS, HEAD_DIM).transpose(0, 2, 1, 3)
    kh = k.reshape(B, S, NUM_HEADS, HEAD_DIM).transpose(0, 2, 1, 3)
    vh = v.reshape(B, S, NUM_HEADS, HEAD_DIM).transpose(0, 2, 1, 3)
    scores = jnp.einsum("bhqd,bhkd->bhqk", qh, kh) / math.sqrt(HEAD_DIM)
    probs = jax.nn.softmax(scores, axis=-1)
    ctx = jnp.einsum("bhqk,bhkd->bhqd", probs, vh)
    ctx = ctx.transpose(0, 2, 1, 3).reshape(B, S, H)
    return jnp.tanh(ctx)


if __name__ == "__main__":
    key = jax.random.PRNGKey(0)
    kx, kq, kk, kv, kbq, kbk, kbv = jax.random.split(key, 7)

    x = jax.random.normal(kx, (BATCH, SEQ, HIDDEN), dtype=jnp.float32)

    # deterministic parameter init (synthetic, not a checkpoint load)
    scale = 1.0 / math.sqrt(HIDDEN)
    wq = jax.random.normal(kq, (HIDDEN, HIDDEN), dtype=jnp.float32) * scale
    wk = jax.random.normal(kk, (HIDDEN, HIDDEN), dtype=jnp.float32) * scale
    wv = jax.random.normal(kv, (HIDDEN, HIDDEN), dtype=jnp.float32) * scale
    bq = jax.random.normal(kbq, (1, HIDDEN), dtype=jnp.float32) * 0.01
    bk = jax.random.normal(kbk, (1, HIDDEN), dtype=jnp.float32) * 0.01
    bv = jax.random.normal(kbv, (1, HIDDEN), dtype=jnp.float32) * 0.01

    out = self_attention(x, wq, wk, wv, bq, bk, bv)
    out = jax.block_until_ready(out)

    ref = reference(x, wq, wk, wv, bq, bk, bv)
    assert out.shape == (BATCH, SEQ, HIDDEN)
    assert jnp.allclose(out, ref, atol=1e-5, rtol=1e-5), "mismatch vs reference"

    print("KERNEL_OK")
</pallas_src>

<mosaic_0001>
module attributes {stable_mosaic.version = 11 : i64} {
  func.func @self_attention_kernel(%arg0: i32, %arg1: memref<16x32xf32, #tpu.memory_space<vmem>>, %arg2: memref<32x96xf32, #tpu.memory_space<vmem>>, %arg3: memref<1x96xf32, #tpu.memory_space<vmem>>, %arg4: memref<16x16xf32, #tpu.memory_space<vmem>>, %arg5: memref<16x32xf32, #tpu.memory_space<vmem>>) attributes {dimension_semantics = [#tpu.dimension_semantics<arbitrary>], iteration_bounds = array<i64: 1>, scalar_prefetch = 0 : i64, scratch_operands = 0 : i64, tpu.core_type = #tpu.core_type<tc>, window_params = [{pipeline_mode = #tpu.pipeline_mode<synchronous>, transform_indices = @transform_0, window_bounds = array<i64: 16, 32>}, {pipeline_mode = #tpu.pipeline_mode<synchronous>, transform_indices = @transform_1, window_bounds = array<i64: 32, 96>}, {pipeline_mode = #tpu.pipeline_mode<synchronous>, transform_indices = @transform_2, window_bounds = array<i64: 1, 96>}, {pipeline_mode = #tpu.pipeline_mode<synchronous>, transform_indices = @transform_3, window_bounds = array<i64: 16, 16>}, {pipeline_mode = #tpu.pipeline_mode<synchronous>, transform_indices = @transform_4, window_bounds = array<i64: 16, 32>}]} {
    %c0 = arith.constant 0 : index
    %c0_0 = arith.constant 0 : index
    %0 = vector.load %arg1[%c0, %c0_0] : memref<16x32xf32, #tpu.memory_space<vmem>>, vector<16x32xf32>
    %c0_1 = arith.constant 0 : index
    %c0_2 = arith.constant 0 : index
    %1 = vector.load %arg2[%c0_1, %c0_2] : memref<32x96xf32, #tpu.memory_space<vmem>>, vector<32x96xf32>
    %cst = arith.constant dense<0.000000e+00> : vector<16x96xf32>
    %2 = tpu.matmul %0, %1, %cst {dimension_numbers = #tpu.dot_dimension_numbers<[1], [0], [0], [1], [0, 0, 1, 1], [], []>} : vector<16x32xf32>, vector<32x96xf32>, vector<16x96xf32> -> vector<16x96xf32>
    %c0_3 = arith.constant 0 : index
    %c0_4 = arith.constant 0 : index
    %3 = vector.load %arg3[%c0_3, %c0_4] : memref<1x96xf32, #tpu.memory_space<vmem>>, vector<1x96xf32>
    %4 = vector.broadcast %3 : vector<1x96xf32> to vector<16x96xf32>
    %5 = arith.addf %2, %4 : vector<16x96xf32>
    %c0_5 = arith.constant 0 : index
    %c0_6 = arith.constant 0 : index
    %6 = vector.load %arg4[%c0_5, %c0_6] : memref<16x16xf32, #tpu.memory_space<vmem>>, vector<16x16xf32>
    %7 = vector.extract_strided_slice %5 {offsets = [0, 0], sizes = [16, 8], strides = [1, 1]} : vector<16x96xf32> to vector<16x8xf32>
    %8 = vector.extract_strided_slice %5 {offsets = [0, 32], sizes = [16, 8], strides = [1, 1]} : vector<16x96xf32> to vector<16x8xf32>
    %9 = vector.extract_strided_slice %5 {offsets = [0, 64], sizes = [16, 8], strides = [1, 1]} : vector<16x96xf32> to vector<16x8xf32>
    %cst_7 = arith.constant dense<0.000000e+00> : vector<16x16xf32>
    %10 = tpu.matmul %7, %8, %cst_7 {dimension_numbers = #tpu.dot_dimension_numbers<[1], [1], [0], [0], [0, 0, 1, 0], [], []>} : vector<16x8xf32>, vector<16x8xf32>, vector<16x16xf32> -> vector<16x16xf32>
    %cst_8 = arith.constant 0.353553385 : f32
    %11 = vector.broadcast %cst_8 : f32 to vector<16x16xf32>
    %12 = arith.mulf %10, %11 : vector<16x16xf32>
    %13 = arith.addf %12, %6 : vector<16x16xf32>
    %cst_9 = arith.constant dense<0xFF800000> : vector<16xf32>
    %14 = vector.multi_reduction <maximumf>, %13, %cst_9 [1] : vector<16x16xf32> to vector<16xf32>
    %15 = vector.shape_cast %14 : vector<16xf32> to vector<16x1xf32>
    %16 = vector.broadcast %15 : vector<16x1xf32> to vector<16x16xf32>
    %17 = arith.subf %13, %16 : vector<16x16xf32>
    %18 = math.exp %17 : vector<16x16xf32>
    %cst_10 = arith.constant dense<0.000000e+00> : vector<16xf32>
    %19 = vector.multi_reduction <add>, %18, %cst_10 [1] : vector<16x16xf32> to vector<16xf32>
    %20 = vector.shape_cast %19 : vector<16xf32> to vector<16x1xf32>
    %21 = tpu.reciprocal %20 : vector<16x1xf32> -> vector<16x1xf32>
    %22 = vector.broadcast %21 : vector<16x1xf32> to vector<16x16xf32>
    %23 = arith.mulf %18, %22 : vector<16x16xf32>
    %cst_11 = arith.constant dense<0.000000e+00> : vector<16x8xf32>
    %24 = tpu.matmul %23, %9, %cst_11 {dimension_numbers = #tpu.dot_dimension_numbers<[1], [0], [0], [1], [0, 0, 1, 1], [], []>} : vector<16x16xf32>, vector<16x8xf32>, vector<16x8xf32> -> vector<16x8xf32>
    %25 = vector.extract_strided_slice %5 {offsets = [0, 8], sizes = [16, 8], strides = [1, 1]} : vector<16x96xf32> to vector<16x8xf32>
    %26 = vector.extract_strided_slice %5 {offsets = [0, 40], sizes = [16, 8], strides = [1, 1]} : vector<16x96xf32> to vector<16x8xf32>
    %27 = vector.extract_strided_slice %5 {offsets = [0, 72], sizes = [16, 8], strides = [1, 1]} : vector<16x96xf32> to vector<16x8xf32>
    %cst_12 = arith.constant dense<0.000000e+00> : vector<16x16xf32>
    %28 = tpu.matmul %25, %26, %cst_12 {dimension_numbers = #tpu.dot_dimension_numbers<[1], [1], [0], [0], [0, 0, 1, 0], [], []>} : vector<16x8xf32>, vector<16x8xf32>, vector<16x16xf32> -> vector<16x16xf32>
    %cst_13 = arith.constant 0.353553385 : f32
    %29 = vector.broadcast %cst_13 : f32 to vector<16x16xf32>
    %30 = arith.mulf %28, %29 : vector<16x16xf32>
    %31 = arith.addf %30, %6 : vector<16x16xf32>
    %cst_14 = arith.constant dense<0xFF800000> : vector<16xf32>
    %32 = vector.multi_reduction <maximumf>, %31, %cst_14 [1] : vector<16x16xf32> to vector<16xf32>
    %33 = vector.shape_cast %32 : vector<16xf32> to vector<16x1xf32>
    %34 = vector.broadcast %33 : vector<16x1xf32> to vector<16x16xf32>
    %35 = arith.subf %31, %34 : vector<16x16xf32>
    %36 = math.exp %35 : vector<16x16xf32>
    %cst_15 = arith.constant dense<0.000000e+00> : vector<16xf32>
    %37 = vector.multi_reduction <add>, %36, %cst_15 [1] : vector<16x16xf32> to vector<16xf32>
    %38 = vector.shape_cast %37 : vector<16xf32> to vector<16x1xf32>
    %39 = tpu.reciprocal %38 : vector<16x1xf32> -> vector<16x1xf32>
    %40 = vector.broadcast %39 : vector<16x1xf32> to vector<16x16xf32>
    %41 = arith.mulf %36, %40 : vector<16x16xf32>
    %cst_16 = arith.constant dense<0.000000e+00> : vector<16x8xf32>
    %42 = tpu.matmul %41, %27, %cst_16 {dimension_numbers = #tpu.dot_dimension_numbers<[1], [0], [0], [1], [0, 0, 1, 1], [], []>} : vector<16x16xf32>, vector<16x8xf32>, vector<16x8xf32> -> vector<16x8xf32>
    %43 = vector.extract_strided_slice %5 {offsets = [0, 16], sizes = [16, 8], strides = [1, 1]} : vector<16x96xf32> to vector<16x8xf32>
    %44 = vector.extract_strided_slice %5 {offsets = [0, 48], sizes = [16, 8], strides = [1, 1]} : vector<16x96xf32> to vector<16x8xf32>
    %45 = vector.extract_strided_slice %5 {offsets = [0, 80], sizes = [16, 8], strides = [1, 1]} : vector<16x96xf32> to vector<16x8xf32>
    %cst_17 = arith.constant dense<0.000000e+00> : vector<16x16xf32>
    %46 = tpu.matmul %43, %44, %cst_17 {dimension_numbers = #tpu.dot_dimension_numbers<[1], [1], [0], [0], [0, 0, 1, 0], [], []>} : vector<16x8xf32>, vector<16x8xf32>, vector<16x16xf32> -> vector<16x16xf32>
    %cst_18 = arith.constant 0.353553385 : f32
    %47 = vector.broadcast %cst_18 : f32 to vector<16x16xf32>
    %48 = arith.mulf %46, %47 : vector<16x16xf32>
    %49 = arith.addf %48, %6 : vector<16x16xf32>
    %cst_19 = arith.constant dense<0xFF800000> : vector<16xf32>
    %50 = vector.multi_reduction <maximumf>, %49, %cst_19 [1] : vector<16x16xf32> to vector<16xf32>
    %51 = vector.shape_cast %50 : vector<16xf32> to vector<16x1xf32>
    %52 = vector.broadcast %51 : vector<16x1xf32> to vector<16x16xf32>
    %53 = arith.subf %49, %52 : vector<16x16xf32>
    %54 = math.exp %53 : vector<16x16xf32>
    %cst_20 = arith.constant dense<0.000000e+00> : vector<16xf32>
    %55 = vector.multi_reduction <add>, %54, %cst_20 [1] : vector<16x16xf32> to vector<16xf32>
    %56 = vector.shape_cast %55 : vector<16xf32> to vector<16x1xf32>
    %57 = tpu.reciprocal %56 : vector<16x1xf32> -> vector<16x1xf32>
    %58 = vector.broadcast %57 : vector<16x1xf32> to vector<16x16xf32>
    %59 = arith.mulf %54, %58 : vector<16x16xf32>
    %cst_21 = arith.constant dense<0.000000e+00> : vector<16x8xf32>
    %60 = tpu.matmul %59, %45, %cst_21 {dimension_numbers = #tpu.dot_dimension_numbers<[1], [0], [0], [1], [0, 0, 1, 1], [], []>} : vector<16x16xf32>, vector<16x8xf32>, vector<16x8xf32> -> vector<16x8xf32>
    %61 = vector.extract_strided_slice %5 {offsets = [0, 24], sizes = [16, 8], strides = [1, 1]} : vector<16x96xf32> to vector<16x8xf32>
    %62 = vector.extract_strided_slice %5 {offsets = [0, 56], sizes = [16, 8], strides = [1, 1]} : vector<16x96xf32> to vector<16x8xf32>
    %63 = vector.extract_strided_slice %5 {offsets = [0, 88], sizes = [16, 8], strides = [1, 1]} : vector<16x96xf32> to vector<16x8xf32>
    %cst_22 = arith.constant dense<0.000000e+00> : vector<16x16xf32>
    %64 = tpu.matmul %61, %62, %cst_22 {dimension_numbers = #tpu.dot_dimension_numbers<[1], [1], [0], [0], [0, 0, 1, 0], [], []>} : vector<16x8xf32>, vector<16x8xf32>, vector<16x16xf32> -> vector<16x16xf32>
    %cst_23 = arith.constant 0.353553385 : f32
    %65 = vector.broadcast %cst_23 : f32 to vector<16x16xf32>
    %66 = arith.mulf %64, %65 : vector<16x16xf32>
    %67 = arith.addf %66, %6 : vector<16x16xf32>
    %cst_24 = arith.constant dense<0xFF800000> : vector<16xf32>
    %68 = vector.multi_reduction <maximumf>, %67, %cst_24 [1] : vector<16x16xf32> to vector<16xf32>
    %69 = vector.shape_cast %68 : vector<16xf32> to vector<16x1xf32>
    %70 = vector.broadcast %69 : vector<16x1xf32> to vector<16x16xf32>
    %71 = arith.subf %67, %70 : vector<16x16xf32>
    %72 = math.exp %71 : vector<16x16xf32>
    %cst_25 = arith.constant dense<0.000000e+00> : vector<16xf32>
    %73 = vector.multi_reduction <add>, %72, %cst_25 [1] : vector<16x16xf32> to vector<16xf32>
    %74 = vector.shape_cast %73 : vector<16xf32> to vector<16x1xf32>
    %75 = tpu.reciprocal %74 : vector<16x1xf32> -> vector<16x1xf32>
    %76 = vector.broadcast %75 : vector<16x1xf32> to vector<16x16xf32>
    %77 = arith.mulf %72, %76 : vector<16x16xf32>
    %cst_26 = arith.constant dense<0.000000e+00> : vector<16x8xf32>
    %78 = tpu.matmul %77, %63, %cst_26 {dimension_numbers = #tpu.dot_dimension_numbers<[1], [0], [0], [1], [0, 0, 1, 1], [], []>} : vector<16x16xf32>, vector<16x8xf32>, vector<16x8xf32> -> vector<16x8xf32>
    %79 = tpu.concatenate %24, %42, %60, %78 in 1 : vector<16x8xf32>, vector<16x8xf32>, vector<16x8xf32>, vector<16x8xf32> -> vector<16x32xf32>
    %80 = math.tanh %79 : vector<16x32xf32>
    %c0_27 = arith.constant 0 : index
    %c0_28 = arith.constant 0 : index
    %81 = vector.load %arg5[%c0_27, %c0_28] : memref<16x32xf32, #tpu.memory_space<vmem>>, vector<16x32xf32>
    tpu.vector_store %arg5[%c0_27, %c0_28], %80 {strides = array<i32>} : memref<16x32xf32, #tpu.memory_space<vmem>>, vector<16x32xf32>,
    return
  }
  func.func @transform_0(%arg0: i32) -> (i32, i32) {
    %c0_i32 = arith.constant 0 : i32
    %c0_i32_0 = arith.constant 0 : i32
    %c0_i32_1 = arith.constant 0 : i32
    return %c0_i32, %c0_i32_0 : i32, i32
  }
  func.func @transform_1(%arg0: i32) -> (i32, i32) {
    %c0_i32 = arith.constant 0 : i32
    %c0_i32_0 = arith.constant 0 : i32
    %c0_i32_1 = arith.constant 0 : i32
    return %c0_i32, %c0_i32_0 : i32, i32
  }
  func.func @transform_2(%arg0: i32) -> (i32, i32) {
    %c0_i32 = arith.constant 0 : i32
    %c0_i32_0 = arith.constant 0 : i32
    %c0_i32_1 = arith.constant 0 : i32
    return %c0_i32, %c0_i32_0 : i32, i32
  }
  func.func @transform_3(%arg0: i32) -> (i32, i32) {
    %c0_i32 = arith.constant 0 : i32
    %c0_i32_0 = arith.constant 0 : i32
    %c0_i32_1 = arith.constant 0 : i32
    return %c0_i32, %c0_i32_0 : i32, i32
  }
  func.func @transform_4(%arg0: i32) -> (i32, i32) {
    %c0_i32 = arith.constant 0 : i32
    %c0_i32_0 = arith.constant 0 : i32
    %c0_i32_1 = arith.constant 0 : i32
    return %c0_i32, %c0_i32_0 : i32, i32
  }
}

</mosaic_0001>

<bundles_post_ra>
// kernel: tpu_custom_call.1
= control target key start
LH: loop header
LB: loop body
LE: loop exit
PB: predicated region body
PF: predicated region fallthrough
CT: control target
= control target key end

     0   :  { %9 = vsyncpa [#allocation3], 0  ;;  %s1071_s0 = inlined_call_operand.hbm [shape: f32[16,32], index: 0, kind: input, shape index: {}]   ;;  %s1072_s1 = inlined_call_operand.hbm [shape: f32[32,96], index: 1, kind: input, shape index: {}]   ;;  %s1073_s2 = inlined_call_operand.vmem [shape: f32[1,96], index: 2, kind: input, shape index: {}]   ;;  %s1074_s3 = inlined_call_operand.hbm [shape: f32[16,16], index: 3, kind: input, shape index: {}]   ;;  %s1075_s4 = inlined_call_operand.hbm [shape: f32[16,32], index: 4, kind: output, shape index: {}]  }
   0x1   :  { %10 = vsyncpa [#allocation6], 0 }
   0x2   :  { %11 = vsyncpa [#allocation4], 0  ;;  %s29_s17 = sshll.u32 %s1072_s1, 4  ;;  %s872_s18 = smov [#allocation5]   ;;  %s30_s17 = int_to_ptr.hbm [resolvable:$true] %s29_s17 }
   0x3   :  { %s31_s19 = sshll.u32 %s872_s18, 4  ;;  %s16_s22 = sshll.u32 %s1071_s0, 4  ;;  %s32_s19 = int_to_ptr.vmem [resolvable:$true] %s31_s19  ;;  %s17_s22 = int_to_ptr.hbm [resolvable:$true] %s16_s22 }
   0x4   :  { %s873_s23 = smov 128   ;;  %s874_s24 = smov 8  }
   0x5   :  { %37 = dma.hbm_to_vmem [thread:$0]  %s30_s17, 512, %s32_s19, [#allocation6], %s873_s23, %s873_s23, %s874_s24  }
   0x6   :  { %s875_s25 = smov [#allocation2]   ;;  %s44_s1 = sshll.u32 %s1074_s3, 4  ;;  %s45_s1 = int_to_ptr.hbm [resolvable:$true] %s44_s1 }
   0x7   :  { %s18_s26 = sshll.u32 %s875_s25, 4  ;;  %s876_s0 = smov [#allocation7]   ;;  %s19_s26 = int_to_ptr.vmem [resolvable:$true] %s18_s26 }
   0x8   :  { %24 = dma.hbm_to_vmem [thread:$0]  %s17_s22, 256, %s19_s26, [#allocation3], %s873_s23, %s873_s23, %s874_s24  }
   0x9   :  { %s46_s29 = sshll.u32 %s876_s0, 4  ;;  %s47_s29 = int_to_ptr.vmem [resolvable:$true] %s46_s29 }
   0xa   :  { %52 = dma.hbm_to_vmem [thread:$0]  %s45_s1, 256, %s47_s29, [#allocation6], %s873_s23, %s873_s23, %s874_s24  }
   0xb   :  { %866 = dma.done.wait [#allocation3], 256  }
   0xc   :  { %867 = vsyncadd [#allocation3], 4294967040 }
   0xd   :  { %868 = dma.done.wait [#allocation6], 768  }
   0xe   :  { %869 = vsyncadd [#allocation6], 4294966528  ;;  %v70_v0 = vld [vmem:[#allocation5 + $0x18] sm:$0xff]  ;;  %v69_v1 = vld [vmem:[#allocation5 + $0x10] sm:$0xff]  ;;  %vm75_vm0 = vcmask 261120   ;;  %s877_s5 = smov 88  }
   0xf   :  { %94 = vmatpush.msra.mxu0 %v70_v0  ;;  %v68_v2 = vld [vmem:[#allocation5 + $0x8] sm:$0xff]  ;;  %v67_v3 = vld [vmem:[#allocation5] sm:$0xff]  ;;  %v65_v4 = vld [vmem:[#allocation2] sm:$0xff]  ;;  %s878_s6 = smov 96   ;;  %s879_s7 = smov 120   ;;  %vm113_vm1 = vcmask 64512  }
  0x10   :  { %v66_v5 = vld [vmem:[#allocation2 + $0x8] sm:$0xff]  ;;  %v733_v6 = vld [vmem:[%s1073_s2] ss:$0 sm:$0xff]  ;;  %s880_s8 = smov 72   ;;  %s881_s2 = smov 64   ;;  %v959_v22 = vld [vmem:[#allocation7] sm:$0xff] }
  0x11   :  { %95 = vmatpush.msra.mxu0 %v69_v1  ;;  %s882_s9 = smov 80   ;;  %s883_s10 = smov 112   ;;  %vm149_vm2 = vcmask 130048   ;;  %v963_v27 = vld [vmem:[#allocation7 + $0x8] sm:$0xff] }
  0x12   :  { %s884_s11 = smov 104   ;;  %s885_s12 = smov 56  }
  0x13   :  { %96 = vmatpush.msra.mxu0 %v68_v2  ;;  %s886_s13 = smov 40   ;;  %s887_s14 = smov 48  }
  0x14   :  { %s888_s15 = smov 16   ;;  %s889_s16 = smov 24  }
  0x15   :  { %97 = vmatpush.msra.mxu0 %v67_v3  ;;  %s890_s17 = smov [#allocation8]   ;;  %s652_s21 = sshll.u32 %s1075_s4, 4  ;;  %s653_s21 = int_to_ptr.hbm [resolvable:$true] %s652_s21 }
  0x16   :  { %666 = vmatmul.msk.f32.vlgmr.msra.gmra.mxu0 %vm75_vm0, %v65_v4  ;;  %s650_s18 = sshll.u32 %s890_s17, 4  ;;  %s651_s18 = int_to_ptr.vmem [resolvable:$true] %s650_s18 }
  0x1e   :  { %667 = vmatmul.msk.f32.gmra.mxu0 %vm75_vm0, %v66_v5 }
  0x93   :  { %v99_v7 = vpop.f32.mrf.mxu0 }
  0x94   :  { %v100_v8 = vadd.f32 %v733_v6, %v99_v7 }
  0x96   :  { %237 = vrot.lane.b32.xlu2 %v100_v8, %s877_s5 }
  0x9b   :  { %v102_v9 = vpop.f32.mrf.mxu0 }
  0x9c   :  { %v940_v10 = vadd.f32 %v733_v6, %v102_v9 }
  0x9e   :  { %111 = vrot.lane.b32.xlu0 %v940_v10, %s878_s6  ;;  %v947_v11 = vpack.i.bf16 %v100_v8, %v940_v10 }
  0xa6   :  { %109 = vrot.lane.b32.xlu0 %v100_v8, %s878_s6 }
  0xae   :  { %233 = vrot.lane.b32.xlu0 %v100_v8, %s879_s7 }
  0xb6   :  { %235 = vrot.lane.b32.xlu0 %v940_v10, %s879_s7 }
  0xbe   :  { %491 = vrot.lane.b32.xlu0 %v940_v10, %s880_s8 }
  0xc6   :  { %714 = vrot.lane.b32.xlu0 %v947_v11, %s881_s2 }
  0xce   :  { %365 = vrot.lane.b32.xlu0 %v940_v10, %s882_s9 }
  0xd6   :  { %359 = vrot.lane.b32.xlu0 %v100_v8, %s883_s10 }
  0xf0   :  { %v238_v37 = vpop.permute.xlu2 %237 }
 0x110   :  { %v112_v12 = vpop.permute.xlu0 %111 }
 0x111   :  { %668 = vmatpush.xpose.msk.msra.mxu1 %vm113_vm1, %v112_v12 }
 0x118   :  { %v110_v13 = vpop.permute.xlu0 %109 }
 0x119   :  { %669 = vmatpush.xpose.msk.msra.mxu1 %vm113_vm1, %v110_v13 }
 0x11c   :  { %670 = vmatmul.msk.f32.vlgmr.msra.gmra.mxu1 %vm113_vm1, %v100_v8 }
 0x120   :  { %v234_v14 = vpop.permute.xlu0 %233 }
 0x124   :  { %671 = vmatmul.msk.f32.gmra.mxu1 %vm113_vm1, %v940_v10 }
 0x128   :  { %v236_v15 = vpop.permute.xlu0 %235 }
 0x130   :  { %v492_v16 = vpop.permute.xlu0 %491 }
 0x138   :  { %v715_v17 = vpop.permute.xlu0 %714 }
 0x139   :  { %v716_v18 = vunpack.i.l.bf16 %v715_v17  ;;  %v717_v19 = vunpack.i.h.bf16 %v715_v17 }
 0x13b   :  { %224 = vmatpush.msrb.mxu0 %v716_v18  ;;  %692 = vmatpush.msra.mxu2 %v716_v18 }
 0x13d   :  { %225 = vmatpush.msrb.mxu0 %v717_v19  ;;  %693 = vmatpush.msra.mxu2 %v717_v19 }
 0x140   :  { %v366_v20 = vpop.permute.xlu0 %365 }
 0x141   :  { %680 = vmatpush.xpose.msk.msra.mxu0 %vm113_vm1, %v366_v20 }
 0x148   :  { %v360_v54 = vpop.permute.xlu0 %359 }
 0x199   :  { %v139_v21 = vpop.f32.mrf.mxu1 }
 0x19a   :  { %v145_v23 = vmul.f32 0.35355338, %v139_v21 }
 0x19c   :  { %v147_v24 = vadd.f32 %v145_v23, %v959_v22 }
 0x19e   :  { %v150_v25 = vsel %vm149_vm2, %v147_v24, -inf }
 0x19f   :  { %151 = vmax.xlane.f32.xlu1 %v150_v25 }
 0x1a1   :  { %v142_v26 = vpop.f32.mrf.mxu1 }
 0x1a2   :  { %v146_v28 = vmul.f32 0.35355338, %v142_v26 }
 0x1a4   :  { %v966_v29 = vadd.f32 %v146_v28, %v963_v27 }
 0x1a6   :  { %v153_v30 = vsel %vm149_vm2, %v966_v29, -inf }
 0x1a7   :  { %154 = vmax.xlane.f32.xlu0 %v153_v30 }
 0x1b8   :  { %239 = vrot.lane.b32.xlu1 %v940_v10, %s877_s5 }
 0x1c0   :  { %489 = vrot.lane.b32.xlu1 %v100_v8, %s880_s8 }
 0x1c8   :  { %485 = vrot.lane.b32.xlu1 %v100_v8, %s884_s11 }
 0x1d0   :  { %363 = vrot.lane.b32.xlu1 %v100_v8, %s882_s9 }
 0x1d8   :  { %361 = vrot.lane.b32.xlu1 %v940_v10, %s883_s10 }
 0x212   :  { %v152_v31 = vpop.xlane.xlu1 %151 }
 0x213   :  { %v156_v32 = vsub.f32 %v147_v24, %v152_v31 }
 0x215   :  { %v158_v33 = vmul.f32 1.442695, %v156_v32 }
 0x217   :  { %734 = vpow2.f32 %v158_v33 }
 0x21a   :  { %v155_v9 = vpop.xlane.xlu0 %154 }
 0x21d   :  { %v735_v34 = vpop.eup %734 }
 0x21e   :  { %v162_v35 = vsel %vm149_vm2, %v735_v34, 0.0 }
 0x21f   :  { %163 = vadd.xlane.f32.xlu2 %v162_v35 }
 0x22a   :  { %v240_v36 = vpop.permute.xlu1 %239 }
 0x22b   :  { %674 = vmatpush.xpose.msk.msra.mxu3 %vm113_vm1, %v240_v36 }
 0x22f   :  { %675 = vmatpush.xpose.msk.msra.mxu3 %vm113_vm1, %v238_v37 }
 0x232   :  { %v490_v38 = vpop.permute.xlu1 %489  ;;  %676 = vmatmul.msk.f32.vlgmr.msra.gmra.mxu3 %vm113_vm1, %v234_v14 }
 0x233   :  { %686 = vmatpush.xpose.msk.msrb.mxu3 %vm113_vm1, %v492_v16 }
 0x237   :  { %687 = vmatpush.xpose.msk.msrb.mxu3 %vm113_vm1, %v490_v38  ;;  %487 = vrot.lane.b32.xlu2 %v940_v10, %s884_s11  ;;  %v157_v10 = vsub.f32 %v966_v29, %v155_v9 }
 0x239   :  { %v160_v12 = vmul.f32 1.442695, %v157_v10 }
 0x23a   :  { %v486_v39 = vpop.permute.xlu1 %485  ;;  %677 = vmatmul.msk.f32.gmra.mxu3 %vm113_vm1, %v236_v15 }
 0x242   :  { %v364_v40 = vpop.permute.xlu1 %363  ;;  %688 = vmatmul.msk.f32.vlgmr.msrb.gmra.mxu3 %vm113_vm1, %v486_v39 }
 0x243   :  { %681 = vmatpush.xpose.msk.msra.mxu0 %vm113_vm1, %v364_v40 }
 0x24a   :  { %v362_v55 = vpop.permute.xlu1 %361 }
 0x292   :  { %v164_v41 = vpop.xlane.xlu2 %163 }
 0x293   :  { %736 = vrcp.f32 %v164_v41  ;;  %v179_v46 = vand.u32 2147483648, %v164_v41  ;;  %v177_v48 = vand.u32 2147483647, %v164_v41  ;;  %vm173_vm4 = vweird.f32 %v164_v41 }
 0x294   :  { %738 = vpow2.f32 %v160_v12 }
 0x295   :  { %v180_v50 = vor.u32 1.1754944e-38, %v179_v46  ;;  %vm178_vm6 = vcmp.eq.f32.partialorder %v177_v48, 8.507059e+37 }
 0x299   :  { %v737_v42 = vpop.eup %736 }
 0x29a   :  { %v169_v43 = vmul.f32 %v737_v42, %v164_v41  ;;  %v488_v44 = vpop.permute.xlu2 %487  ;;  %vm174_vm3 = vweird.f32 %v737_v42  ;;  %v1003_v23 = vpop.eup %738 }
 0x29b   :  { %689 = vmatmul.msk.f32.gmra.mxu3 %vm113_vm1, %v488_v44  ;;  %vm175_vm5 = vmor %vm173_vm4, %vm174_vm3  ;;  %v165_v28 = vsel %vm149_vm2, %v1003_v23, 0.0 }
 0x29c   :  { %v170_v45 = vsub.f32 1.0, %v169_v43 }
 0x29e   :  { %v171_v47 = vmul.f32 %v737_v42, %v170_v45 }
 0x2a0   :  { %v172_v49 = vadd.f32 %v737_v42, %v171_v47 }
 0x2a2   :  { %v176_v51 = vsel %vm175_vm5, %v737_v42, %v172_v49 }
 0x2a3   :  { %v181_v52 = vsel %vm178_vm6, %v180_v50, %v176_v51 }
 0x2a4   :  { %v196_v53 = vmul.f32 %v735_v34, %v181_v52 }
 0x2a6   :  { %672 = vmatmul.msk.f32.vlgmr.msrb.gmra.mxu0 %vm149_vm2, %v196_v53 }
 0x2ae   :  { %682 = vmatmul.msk.f32.vlgmr.msra.gmra.mxu0 %vm113_vm1, %v360_v54 }
 0x2b5   :  { %v266_v56 = vpop.f32.mrf.mxu3 }
 0x2b6   :  { %v272_v57 = vmul.f32 0.35355338, %v266_v56  ;;  %683 = vmatmul.msk.f32.gmra.mxu0 %vm113_vm1, %v362_v55 }
 0x2b8   :  { %v274_v58 = vadd.f32 %v272_v57, %v959_v22 }
 0x2ba   :  { %v276_v59 = vsel %vm149_vm2, %v274_v58, -inf }
 0x2bb   :  { %277 = vmax.xlane.f32.xlu1 %v276_v59 }
 0x2bd   :  { %v269_v60 = vpop.f32.mrf.mxu3 }
 0x2be   :  { %v273_v61 = vmul.f32 0.35355338, %v269_v60 }
 0x2c0   :  { %v275_v62 = vadd.f32 %v273_v61, %v963_v27 }
 0x2c2   :  { %v279_v63 = vsel %vm149_vm2, %v275_v62, -inf }
 0x2c3   :  { %280 = vmax.xlane.f32.xlu2 %v279_v63 }
 0x2c5   :  { %v518_v0 = vpop.f32.mrf.mxu3 }
 0x2c6   :  { %v524_v1 = vmul.f32 0.35355338, %v518_v0 }
 0x2c8   :  { %v526_v2 = vadd.f32 %v524_v1, %v959_v22 }
 0x2ca   :  { %v528_v3 = vsel %vm149_vm2, %v526_v2, -inf }
 0x2cb   :  { %529 = vmax.xlane.f32.xlu0 %v528_v3 }
 0x31e   :  { %v521_v4 = vpop.f32.mrf.mxu3 }
 0x31f   :  { %v525_v5 = vmul.f32 0.35355338, %v521_v4 }
 0x321   :  { %v527_v6 = vadd.f32 %v525_v5, %v963_v27 }
 0x323   :  { %v997_v7 = vpop.f32.mrf.mxu0  ;;  %v531_v8 = vsel %vm149_vm2, %v527_v6, -inf }
 0x324   :  { %532 = vmax.xlane.f32.xlu0 %v531_v8 }
 0x32b   :  { %v392_v13 = vpop.f32.mrf.mxu0 }
 0x32c   :  { %v398_v14 = vmul.f32 0.35355338, %v392_v13 }
 0x32e   :  { %v278_v15 = vpop.xlane.xlu1 %277  ;;  %v400_v16 = vadd.f32 %v398_v14, %v959_v22 }
 0x32f   :  { %v282_v17 = vsub.f32 %v274_v58, %v278_v15 }
 0x330   :  { %v402_v18 = vsel %vm149_vm2, %v400_v16, -inf }
 0x331   :  { %v284_v19 = vmul.f32 1.442695, %v282_v17  ;;  %403 = vmax.xlane.f32.xlu1 %v402_v18 }
 0x333   :  { %740 = vpow2.f32 %v284_v19  ;;  %v395_v20 = vpop.f32.mrf.mxu0 }
 0x334   :  { %v399_v21 = vmul.f32 0.35355338, %v395_v20 }
 0x336   :  { %v401_v24 = vadd.f32 %v399_v21, %v963_v27  ;;  %v281_v25 = vpop.xlane.xlu2 %280 }
 0x337   :  { %v283_v26 = vsub.f32 %v275_v62, %v281_v25 }
 0x338   :  { %v405_v22 = vsel %vm149_vm2, %v401_v24, -inf }
 0x339   :  { %v1009_v29 = vpop.eup %740  ;;  %v286_v30 = vmul.f32 1.442695, %v283_v26  ;;  %166 = vadd.xlane.f32.xlu1 %v165_v28  ;;  %406 = vmax.xlane.f32.xlu2 %v405_v22 }
 0x33a   :  { %v288_v31 = vsel %vm149_vm2, %v1009_v29, 0.0 }
 0x33b   :  { %742 = vpow2.f32 %v286_v30  ;;  %289 = vadd.xlane.f32.xlu0 %v288_v31 }
 0x33e   :  { %v530_v32 = vpop.xlane.xlu0 %529 }
 0x33f   :  { %v534_v33 = vsub.f32 %v526_v2, %v530_v32 }
 0x341   :  { %v1013_v27 = vpop.eup %742  ;;  %v536_v34 = vmul.f32 1.442695, %v534_v33 }
 0x342   :  { %v291_v35 = vsel %vm149_vm2, %v1013_v27, 0.0 }
 0x343   :  { %744 = vpow2.f32 %v536_v34  ;;  %292 = vadd.xlane.f32.xlu2 %v291_v35 }
 0x349   :  { %v1017_v36 = vpop.eup %744 }
 0x34a   :  { %v540_v37 = vsel %vm149_vm2, %v1017_v36, 0.0 }
 0x34b   :  { %541 = vadd.xlane.f32.xlu1 %v540_v37 }
 0x34f   :  { %719 = vrot.lane.b32.xlu0 %v947_v11, %s885_s12 }
 0x397   :  { %v533_v38 = vpop.xlane.xlu0 %532 }
 0x398   :  { %v535_v39 = vsub.f32 %v527_v6, %v533_v38 }
 0x39a   :  { %v538_v40 = vmul.f32 1.442695, %v535_v39 }
 0x39c   :  { %746 = vpow2.f32 %v538_v40 }
 0x3a2   :  { %v1022_v41 = vpop.eup %746 }
 0x3a3   :  { %v543_v42 = vsel %vm149_vm2, %v1022_v41, 0.0 }
 0x3a4   :  { %544 = vadd.xlane.f32.xlu1 %v543_v42  ;;  %v404_v43 = vpop.xlane.xlu1 %403 }
 0x3a5   :  { %v408_v44 = vsub.f32 %v400_v16, %v404_v43 }
 0x3a7   :  { %v410_v45 = vmul.f32 1.442695, %v408_v44 }
 0x3a9   :  { %748 = vpow2.f32 %v410_v45 }
 0x3ac   :  { %v167_v46 = vpop.xlane.xlu1 %166  ;;  %v407_v47 = vpop.xlane.xlu2 %406 }
 0x3ad   :  { %750 = vrcp.f32 %v167_v46  ;;  %v409_v48 = vsub.f32 %v401_v24, %v407_v47  ;;  %v193_v60 = vand.u32 2147483648, %v167_v46  ;;  %v191_v61 = vand.u32 2147483647, %v167_v46 }
 0x3ae   :  { %v290_v49 = vpop.xlane.xlu0 %289  ;;  %vm187_vm8 = vweird.f32 %v167_v46 }
 0x3af   :  { %v1026_v50 = vpop.eup %748  ;;  %v412_v51 = vmul.f32 1.442695, %v409_v48  ;;  %752 = vrcp.f32 %v290_v49  ;;  %v194_v3 = vor.u32 1.1754944e-38, %v193_v60  ;;  %vm192_vm11 = vcmp.eq.f32.partialorder %v191_v61, 8.507059e+37 }
 0x3b0   :  { %v414_v52 = vsel %vm149_vm2, %v1026_v50, 0.0  ;;  %v305_v8 = vand.u32 2147483648, %v290_v49  ;;  %vm299_vm12 = vweird.f32 %v290_v49  ;;  %v303_v10 = vand.u32 2147483647, %v290_v49 }
 0x3b1   :  { %754 = vpow2.f32 %v412_v51  ;;  %415 = vadd.xlane.f32.xlu2 %v414_v52 }
 0x3b2   :  { %v306_v16 = vor.u32 1.1754944e-38, %v305_v8  ;;  %vm304_vm14 = vcmp.eq.f32.partialorder %v303_v10, 8.507059e+37 }
 0x3b3   :  { %v751_v53 = vpop.eup %750 }
 0x3b4   :  { %v183_v54 = vmul.f32 %v751_v53, %v167_v46  ;;  %vm188_vm7 = vweird.f32 %v751_v53 }
 0x3b5   :  { %v753_v55 = vpop.eup %752  ;;  %vm189_vm9 = vmor %vm187_vm8, %vm188_vm7 }
 0x3b6   :  { %v184_v56 = vsub.f32 1.0, %v183_v54  ;;  %v295_v57 = vmul.f32 %v753_v55, %v290_v49  ;;  %v293_v58 = vpop.xlane.xlu2 %292  ;;  %vm300_vm10 = vweird.f32 %v753_v55 }
 0x3b7   :  { %v1030_v59 = vpop.eup %754  ;;  %756 = vrcp.f32 %v293_v58  ;;  %vm301_vm13 = vmor %vm299_vm12, %vm300_vm10  ;;  %v319_v25 = vand.u32 2147483648, %v293_v58  ;;  %vm313_vm3 = vweird.f32 %v293_v58  ;;  %v317_v26 = vand.u32 2147483647, %v293_v58 }
 0x3b8   :  { %v185_v62 = vmul.f32 %v751_v53, %v184_v56  ;;  %v296_v63 = vsub.f32 1.0, %v295_v57  ;;  %v417_v0 = vsel %vm149_vm2, %v1030_v59, 0.0 }
 0x3b9   :  { %418 = vadd.xlane.f32.xlu2 %v417_v0  ;;  %v320_v22 = vor.u32 1.1754944e-38, %v319_v25  ;;  %vm318_vm5 = vcmp.eq.f32.partialorder %v317_v26, 8.507059e+37 }
 0x3ba   :  { %v297_v1 = vmul.f32 %v753_v55, %v296_v63  ;;  %v186_v2 = vadd.f32 %v751_v53, %v185_v62 }
 0x3bc   :  { %v298_v4 = vadd.f32 %v753_v55, %v297_v1  ;;  %v190_v5 = vsel %vm189_vm9, %v751_v53, %v186_v2 }
 0x3bd   :  { %v757_v6 = vpop.eup %756  ;;  %724 = vrot.lane.b32.xlu1 %v947_v11, %s886_s13  ;;  %v195_v9 = vsel %vm192_vm11, %v194_v3, %v190_v5 }
 0x3be   :  { %v309_v12 = vmul.f32 %v757_v6, %v293_v58  ;;  %v197_v13 = vmul.f32 %v1003_v23, %v195_v9  ;;  %v302_v15 = vsel %vm301_vm13, %v753_v55, %v298_v4  ;;  %vm314_vm15 = vweird.f32 %v757_v6  ;;  %v542_v32 = vpop.xlane.xlu1 %541 }
 0x3bf   :  { %v307_v20 = vsel %vm304_vm14, %v306_v16, %v302_v15  ;;  %vm315_vm4 = vmor %vm313_vm3, %vm314_vm15  ;;  %758 = vrcp.f32 %v542_v32  ;;  %v557_v43 = vand.u32 2147483648, %v542_v32  ;;  %vm551_vm7 = vweird.f32 %v542_v32 }
 0x3c0   :  { %v310_v14 = vsub.f32 1.0, %v309_v12  ;;  %673 = vmatmul.msk.f32.vlgmr.msra.gmra.mxu2 %vm149_vm2, %v197_v13  ;;  %v322_v23 = vmul.f32 %v1009_v29, %v307_v20  ;;  %v555_v44 = vand.u32 2147483647, %v542_v32 }
 0x3c1   :  { %v720_v17 = vpop.permute.xlu0 %719  ;;  %v558_v49 = vor.u32 1.1754944e-38, %v557_v43 }
 0x3c2   :  { %v311_v18 = vmul.f32 %v757_v6, %v310_v14  ;;  %v721_v19 = vunpack.i.l.bf16 %v720_v17  ;;  %v722_v21 = vunpack.i.h.bf16 %v720_v17  ;;  %vm556_vm9 = vcmp.eq.f32.partialorder %v555_v44, 8.507059e+37 }
 0x3c4   :  { %350 = vmatpush.msrb.mxu2 %v721_v19  ;;  %v312_v24 = vadd.f32 %v757_v6, %v311_v18 }
 0x3c5   :  { %v759_v34 = vpop.eup %758 }
 0x3c6   :  { %351 = vmatpush.msrb.mxu2 %v722_v21  ;;  %v316_v28 = vsel %vm315_vm4, %v757_v6, %v312_v24  ;;  %v547_v29 = vmul.f32 %v759_v34, %v542_v32  ;;  %vm552_vm6 = vweird.f32 %v759_v34 }
 0x3c7   :  { %v321_v30 = vsel %vm318_vm5, %v320_v22, %v316_v28  ;;  %vm553_vm8 = vmor %vm551_vm7, %vm552_vm6 }
 0x3c8   :  { %678 = vmatmul.msk.f32.vlgmr.msrb.gmra.mxu2 %vm149_vm2, %v322_v23  ;;  %v323_v31 = vmul.f32 %v1013_v27, %v321_v30  ;;  %v548_v35 = vsub.f32 1.0, %v547_v29 }
 0x3ca   :  { %v549_v38 = vmul.f32 %v759_v34, %v548_v35 }
 0x3cc   :  { %v550_v42 = vadd.f32 %v759_v34, %v549_v38 }
 0x3d0   :  { %679 = vmatmul.msk.f32.gmra.mxu2 %vm149_vm2, %v323_v31 }
 0x3d1   :  { %729 = vrot.lane.b32.xlu2 %v947_v11, %s887_s14  ;;  %v554_v11 = vsel %vm553_vm8, %v759_v34, %v550_v42 }
 0x3d2   :  { %v559_v52 = vsel %vm556_vm9, %v558_v49, %v554_v11  ;;  %vm639_vm9 = vcmask 195584  }
 0x3d3   :  { %v574_v3 = vmul.f32 %v1017_v36, %v559_v52 }
 0x417   :  { %v545_v33 = vpop.xlane.xlu1 %544 }
 0x418   :  { %760 = vrcp.f32 %v545_v33  ;;  %vm565_vm12 = vweird.f32 %v545_v33  ;;  %v571_v60 = vand.u32 2147483648, %v545_v33  ;;  %v569_v0 = vand.u32 2147483647, %v545_v33 }
 0x41a   :  { %v572_v9 = vor.u32 1.1754944e-38, %v571_v60  ;;  %vm570_vm4 = vcmp.eq.f32.partialorder %v569_v0, 8.507059e+37 }
 0x41e   :  { %v761_v37 = vpop.eup %760 }
 0x41f   :  { %v561_v39 = vmul.f32 %v761_v37, %v545_v33  ;;  %vm566_vm10 = vweird.f32 %v761_v37 }
 0x420   :  { %vm1042_vm14 = vmor %vm565_vm12, %vm566_vm10 }
 0x421   :  { %v562_v27 = vsub.f32 1.0, %v561_v39 }
 0x423   :  { %v563_v46 = vmul.f32 %v761_v37, %v562_v27 }
 0x424   :  { %v416_v40 = vpop.xlane.xlu2 %415 }
 0x425   :  { %762 = vrcp.f32 %v416_v40  ;;  %v429_v53 = vand.u32 2147483647, %v416_v40  ;;  %v431_v54 = vand.u32 2147483648, %v416_v40  ;;  %v564_v58 = vadd.f32 %v761_v37, %v563_v46 }
 0x426   :  { %vm425_vm13 = vweird.f32 %v416_v40 }
 0x427   :  { %v432_v2 = vor.u32 1.1754944e-38, %v431_v54  ;;  %vm430_vm3 = vcmp.eq.f32.partialorder %v429_v53, 8.507059e+37  ;;  %v568_v8 = vsel %vm1042_vm14, %v761_v37, %v564_v58 }
 0x428   :  { %v573_v16 = vsel %vm570_vm4, %v572_v9, %v568_v8 }
 0x429   :  { %v575_v21 = vmul.f32 %v1022_v41, %v573_v16 }
 0x42b   :  { %v763_v45 = vpop.eup %762 }
 0x42c   :  { %v421_v47 = vmul.f32 %v763_v45, %v416_v40  ;;  %v419_v48 = vpop.xlane.xlu2 %418  ;;  %vm426_vm11 = vweird.f32 %v763_v45 }
 0x42d   :  { %764 = vrcp.f32 %v419_v48  ;;  %vm427_vm15 = vmor %vm425_vm13, %vm426_vm11  ;;  %v445_v14 = vand.u32 2147483648, %v419_v48  ;;  %v443_v18 = vand.u32 2147483647, %v419_v48  ;;  %vm439_vm6 = vweird.f32 %v419_v48 }
 0x42e   :  { %v422_v51 = vsub.f32 1.0, %v421_v47 }
 0x42f   :  { %v725_v55 = vpop.permute.xlu1 %724  ;;  %v446_v20 = vor.u32 1.1754944e-38, %v445_v14  ;;  %vm444_vm8 = vcmp.eq.f32.partialorder %v443_v18, 8.507059e+37 }
 0x430   :  { %v423_v56 = vmul.f32 %v763_v45, %v422_v51  ;;  %v726_v57 = vunpack.i.l.bf16 %v725_v55  ;;  %v727_v62 = vunpack.i.h.bf16 %v725_v55 }
 0x432   :  { %v424_v61 = vadd.f32 %v763_v45, %v423_v56  ;;  %602 = vmatpush.msra.mxu2 %v726_v57 }
 0x433   :  { %v765_v1 = vpop.eup %764 }
 0x434   :  { %v435_v4 = vmul.f32 %v765_v1, %v419_v48  ;;  %603 = vmatpush.msra.mxu2 %v727_v62  ;;  %v730_v5 = vpop.permute.xlu2 %729  ;;  %v428_v6 = vsel %vm427_vm15, %v763_v45, %v424_v61  ;;  %vm440_vm5 = vweird.f32 %v765_v1 }
 0x435   :  { %690 = vmatmul.msk.f32.vlgmr.msra.gmra.mxu2 %vm149_vm2, %v574_v3  ;;  %v731_v10 = vunpack.i.l.bf16 %v730_v5  ;;  %v433_v12 = vsel %vm430_vm3, %v432_v2, %v428_v6  ;;  %v732_v15 = vunpack.i.h.bf16 %v730_v5  ;;  %vm441_vm7 = vmor %vm439_vm6, %vm440_vm5 }
 0x436   :  { %v436_v13 = vsub.f32 1.0, %v435_v4  ;;  %v448_v17 = vmul.f32 %v1026_v50, %v433_v12 }
 0x437   :  { %476 = vmatpush.msrb.mxu1 %v731_v10 }
 0x438   :  { %v437_v36 = vmul.f32 %v765_v1, %v436_v13 }
 0x439   :  { %477 = vmatpush.msrb.mxu1 %v732_v15 }
 0x43a   :  { %684 = vmatmul.msk.f32.vlgmr.msrb.gmra.mxu1 %vm149_vm2, %v448_v17  ;;  %v438_v19 = vadd.f32 %v765_v1, %v437_v36 }
 0x43c   :  { %v442_v24 = vsel %vm441_vm7, %v765_v1, %v438_v19 }
 0x43d   :  { %691 = vmatmul.msk.f32.gmra.mxu2 %vm149_vm2, %v575_v21  ;;  %v447_v25 = vsel %vm444_vm8, %v446_v20, %v442_v24 }
 0x43e   :  { %v449_v23 = vmul.f32 %v1030_v59, %v447_v25 }
 0x442   :  { %685 = vmatmul.msk.f32.gmra.mxu1 %vm149_vm2, %v449_v23 }
 0x443   :  { %v230_v50 = vpop.f32.mrf.mxu2 }
 0x44b   :  { %v353_v26 = vpop.f32.mrf.mxu2 }
 0x44c   :  { %613 = vrot.lane.b32.xlu0 %v353_v26, %s874_s24 }
 0x453   :  { %v356_v28 = vpop.f32.mrf.mxu2 }
 0x454   :  { %615 = vrot.lane.b32.xlu0 %v356_v28, %s874_s24 }
 0x4b7   :  { %v479_v22 = vpop.f32.mrf.mxu1 }
 0x4b8   :  { %v605_v30 = vpop.f32.mrf.mxu2  ;;  %621 = vrot.lane.b32.xlu1 %v479_v22, %s888_s15 }
 0x4b9   :  { %629 = vrot.lane.b32.xlu2 %v605_v30, %s889_s16 }
 0x4be   :  { %v614_v59 = vpop.permute.xlu0 %613 }
 0x4bf   :  { %v482_v41 = vpop.f32.mrf.mxu1  ;;  %v635_v32 = vsel %vm113_vm1, %v997_v7, %v614_v59 }
 0x4c0   :  { %v608_v31 = vpop.f32.mrf.mxu2  ;;  %623 = vrot.lane.b32.xlu0 %v482_v41, %s888_s15 }
 0x4c1   :  { %631 = vrot.lane.b32.xlu1 %v608_v31, %s889_s16 }
 0x4c6   :  { %v616_v33 = vpop.permute.xlu0 %615 }
 0x4c7   :  { %v636_v38 = vsel %vm113_vm1, %v230_v50, %v616_v33 }
 0x513   :  { %v630_v29 = vpop.permute.xlu2 %629 }
 0x52a   :  { %v622_v34 = vpop.permute.xlu1 %621 }
 0x52b   :  { %v637_v35 = vsel %vm149_vm2, %v635_v32, %v622_v34 }
 0x52c   :  { %v640_v37 = vsel %vm639_vm9, %v637_v35, %v630_v29 }
 0x52d   :  { %766 = vtanh.f32 %v640_v37 }
 0x532   :  { %v624_v39 = vpop.permute.xlu0 %623 }
 0x533   :  { %v767_v40 = vpop.eup %766  ;;  %v638_v42 = vsel %vm149_vm2, %v636_v38, %v624_v39  ;;  %v632_v27 = vpop.permute.xlu1 %631 }
 0x534   :  { %644 = vst.msk [vmem:[#allocation8] sm:$0xff] %vm75_vm0, %v767_v40  ;;  %v641_v43 = vsel %vm639_vm9, %v638_v42, %v632_v27 }
 0x535   :  { %768 = vtanh.f32 %v641_v43 }
 0x53b   :  { %v769_v7 = vpop.eup %768 }
 0x53c   :  { %645 = vst.msk [vmem:[#allocation8 + $0x8] sm:$0xff] %vm75_vm0, %v769_v7 }
 0x53d   :  { %658 = dma.vmem_to_hbm [thread:$0]  %s651_s18, 256, %s653_s21, [#allocation4], %s873_s23, %s873_s23, %s874_s24  }
 0x53e   :  { %870 = dma.done.wait [#allocation4], 256  }
 0x53f   :  { %871 = vsyncadd [#allocation4], 4294967040 }
 0x540   :  { %663 = vsyncpa [#allocation3], 1 }
 0x541   :  { %664 = vsyncpa [#allocation6], 1 }
 0x542   :  { %665 = vsyncpa [#allocation4], 1 }

</bundles_post_ra>
